<compile_context>
chip_gen: v6e
topology: v6e:2x2x1
jax: 0.10.0
libtpu: 0.0.40
codegen_flags: <defaults>
</compile_context>

<pallas_src>
import functools

import jax
import jax.numpy as jnp
from jax import lax
from jax.experimental import pallas as pl
from jax.experimental.pallas import tpu as pltpu


# ----------------------------- Pallas kernel ----------------------------------
def _window_attn_kernel(x_ref, wq_ref, wk_ref, wv_ref, bq_ref, bk_ref, bv_ref,
                        bias_ref, wp_ref, bp_ref, o_ref, acc_ref, *, scale):
    """One (window, head) grid step of fused W-MSA.

    x_ref    : (1, N, C)    tokens of this window
    wq/wk/wv : (1, C, hd)   per-head qkv weight slices
    bq/bk/bv : (1, 1, hd)   per-head qkv bias slices
    bias_ref : (1, 1, N, N) relative-position bias (+ shift mask), zero-padded
                            for the 2 extra tokens when add_token=True
    wp_ref   : (1, hd, C)   output-projection rows for this head
    bp_ref   : (1, C)       output-projection bias
    o_ref    : (1, N, C)    output tokens
    acc_ref  : (N, C) f32   VMEM accumulator over heads
    """
    h = pl.program_id(1)
    nh = pl.num_programs(1)

    x = x_ref[0]                                                         # (N, C)
    q = jnp.dot(x, wq_ref[0], preferred_element_type=jnp.float32) + bq_ref[0]
    k = jnp.dot(x, wk_ref[0], preferred_element_type=jnp.float32) + bk_ref[0]
    v = jnp.dot(x, wv_ref[0], preferred_element_type=jnp.float32) + bv_ref[0]

    # attn = (q * scale) @ k^T + bias   (contract over head_dim; no transpose op)
    attn = lax.dot_general(q * scale, k, (((1,), (1,)), ((), ())),
                           preferred_element_type=jnp.float32)
    attn = attn + bias_ref[0, 0]                                         # (N, N)

    # numerically stable softmax over keys
    attn = attn - jnp.max(attn, axis=-1, keepdims=True)
    p = jnp.exp(attn)
    p = p / jnp.sum(p, axis=-1, keepdims=True)
    # TODO(synk): attn_drop / proj_drop are identity at p=0.0 (eval mode); not lowered.

    oh = jnp.dot(p, v, preferred_element_type=jnp.float32)               # (N, hd)
    contrib = jnp.dot(oh, wp_ref[0], preferred_element_type=jnp.float32)  # (N, C)

    @pl.when(h == 0)
    def _init():
        acc_ref[...] = jnp.zeros_like(acc_ref)

    acc_ref[...] += contrib

    @pl.when(h == nh - 1)
    def _finalize():
        o_ref[0] = (acc_ref[...] + bp_ref[...]).astype(o_ref.dtype)


# ----------------------------- glue (plain JAX) --------------------------------
def make_relative_position_index(window_size):
    """Mirrors the PyTorch buffer construction (torch.meshgrid is 'ij')."""
    Wh, Ww = window_size
    coords = jnp.stack(jnp.meshgrid(jnp.arange(Wh), jnp.arange(Ww), indexing="ij"))
    coords_flatten = coords.reshape(2, -1)                          # (2, M)
    rel = coords_flatten[:, :, None] - coords_flatten[:, None, :]   # (2, M, M)
    rel = rel.transpose(1, 2, 0)                                    # (M, M, 2)
    rel = rel.at[:, :, 0].add(Wh - 1)
    rel = rel.at[:, :, 1].add(Ww - 1)
    rel = rel.at[:, :, 0].multiply(2 * Ww - 1)
    return rel.sum(-1)                                              # (M, M)


def window_attention(x, params, window_size, num_heads, *, add_token=True,
                     mask=None, qk_scale=None):
    """Fused Pallas forward of WindowAttention.forward.

    x: (B_, N, C) with N = Wh*Ww (+2 if add_token).
    mask: (nW, Wh*Ww, Wh*Ww) of 0 / large-negative values, or None.
    Linear weights are stored in math orientation (y = x @ W + b), i.e. the
    transpose of PyTorch nn.Linear.weight.
    """
    B_, N, C = x.shape
    Wh, Ww = window_size
    M = Wh * Ww
    pad = 2 if add_token else 0
    assert N == M + pad, f"token count {N} != window {M} + {pad}"
    hd = C // num_heads
    scale = float(qk_scale) if qk_scale is not None else hd ** (-0.5)

    # --- relative position bias (+ optional shift mask) -> one (nW, H, N, N) slab
    rel_index = make_relative_position_index(window_size)          # (M, M)
    rpb = params["rpb_table"][rel_index.reshape(-1)]               # (M*M, H)
    rpb = rpb.reshape(M, M, num_heads).transpose(2, 0, 1)          # (H, M, M)
    rpb = jnp.pad(rpb, ((0, 0), (pad, 0), (pad, 0)))               # (H, N, N)
    if mask is not None:
        nW = mask.shape[0]
        m = jnp.pad(mask, ((0, 0), (pad, 0), (pad, 0)))            # (nW, N, N)
        bias = rpb[None, :, :, :] + m[:, None, :, :]               # (nW, H, N, N)
    else:
        nW = 1
        bias = rpb[None]                                           # (1, H, N, N)
    bias = bias.astype(jnp.float32)

    # --- pre-slice weights per head (one-time, wrapper side) ---
    wqkv = params["w_qkv"].reshape(C, 3, num_heads, hd).transpose(1, 2, 0, 3)
    wq3, wk3, wv3 = wqkv[0], wqkv[1], wqkv[2]                      # (H, C, hd)
    bqkv = params["b_qkv"].reshape(3, num_heads, 1, hd)
    bq3, bk3, bv3 = bqkv[0], bqkv[1], bqkv[2]                      # (H, 1, hd)
    wp3 = params["w_proj"].reshape(num_heads, hd, C)               # (H, hd, C)
    bp2 = params["b_proj"].reshape(1, C)                           # (1, C)

    head_w = pl.BlockSpec((1, C, hd), lambda b, h: (h, 0, 0))
    head_b = pl.BlockSpec((1, 1, hd), lambda b, h: (h, 0, 0))

    kernel = functools.partial(_window_attn_kernel, scale=scale)
    return pl.pallas_call(
        kernel,
        out_shape=jax.ShapeDtypeStruct((B_, N, C), jnp.float32),
        grid=(B_, num_heads),
        in_specs=[
            pl.BlockSpec((1, N, C), lambda b, h: (b, 0, 0)),                 # x
            head_w, head_w, head_w,                                          # wq wk wv
            head_b, head_b, head_b,                                          # bq bk bv
            pl.BlockSpec((1, 1, N, N), lambda b, h: (b % nW, h, 0, 0)),      # bias+mask
            pl.BlockSpec((1, hd, C), lambda b, h: (h, 0, 0)),                # w_proj rows
            pl.BlockSpec((1, C), lambda b, h: (0, 0)),                       # b_proj
        ],
        out_specs=pl.BlockSpec((1, N, C), lambda b, h: (b, 0, 0)),
        scratch_shapes=[pltpu.VMEM((N, C), jnp.float32)],
        compiler_params=pltpu.CompilerParams(
            dimension_semantics=("parallel", "arbitrary")),
    )(x, wq3, wk3, wv3, bq3, bk3, bv3, bias, wp3, bp2)


# ----------------------------- pure-JAX reference -------------------------------
def window_attention_ref(x, params, window_size, num_heads, *, add_token=True,
                         mask=None, qk_scale=None):
    B_, N, C = x.shape
    Wh, Ww = window_size
    M = Wh * Ww
    hd = C // num_heads
    scale = float(qk_scale) if qk_scale is not None else hd ** (-0.5)
    qkv = x @ params["w_qkv"] + params["b_qkv"]
    qkv = qkv.reshape(B_, N, 3, num_heads, hd).transpose(2, 0, 3, 1, 4)
    q, k, v = qkv[0] * scale, qkv[1], qkv[2]
    attn = jnp.einsum("bhqd,bhkd->bhqk", q, k)
    rel_index = make_relative_position_index(window_size)
    rpb = params["rpb_table"][rel_index.reshape(-1)].reshape(M, M, num_heads)
    rpb = rpb.transpose(2, 0, 1)
    if add_token:
        attn = attn.at[:, :, 2:, 2:].add(rpb[None])
    else:
        attn = attn + rpb[None]
    if mask is not None:
        nW = mask.shape[0]
        m = jnp.pad(mask, ((0, 0), (2, 0), (2, 0))) if add_token else mask
        attn = attn.reshape(B_ // nW, nW, num_heads, N, N) + m[None, :, None]
        attn = attn.reshape(B_, num_heads, N, N)
    attn = jax.nn.softmax(attn, axis=-1)
    out = jnp.einsum("bhqk,bhkd->bhqd", attn, v)
    out = out.transpose(0, 2, 1, 3).reshape(B_, N, C)
    return out @ params["w_proj"] + params["b_proj"]


# ----------------------------- main ---------------------------------------------
if __name__ == "__main__":
    key = jax.random.PRNGKey(0)
    B, nW = 2, 4                      # batch, windows per image
    window_size = (4, 4)
    num_heads = 4
    C = 32
    add_token = True
    M = window_size[0] * window_size[1]
    N = M + (2 if add_token else 0)   # 18 (2 extra tokens)
    B_ = B * nW                        # 8
    num_rel = (2 * window_size[0] - 1) * (2 * window_size[1] - 1)  # 49

    ks = jax.random.split(key, 6)
    params = {
        # math orientation: y = x @ W + b  (transpose of nn.Linear.weight)
        "w_qkv": jax.random.normal(ks[0], (C, 3 * C), jnp.float32) * 0.1,
        "b_qkv": jax.random.normal(ks[1], (3 * C,), jnp.float32) * 0.05,
        "w_proj": jax.random.normal(ks[2], (C, C), jnp.float32) * 0.1,
        "b_proj": jax.random.normal(ks[3], (C,), jnp.float32) * 0.05,
        # TODO(synk): PyTorch uses trunc_normal_(std=0.02); plain normal init here.
        "rpb_table": jax.random.normal(ks[4], (num_rel, num_heads), jnp.float32) * 0.5,
    }

    x = jax.random.normal(ks[5], (B_, N, C), jnp.float32)

    # deterministic shifted-window-style mask: 0 within a group, -100 across groups
    tok_grp = (jnp.arange(M)[None, :] // 4 + jnp.arange(nW)[:, None]) % 2   # (nW, M)
    mask = jnp.where(tok_grp[:, :, None] == tok_grp[:, None, :], 0.0, -100.0)
    mask = mask.astype(jnp.float32)

    out = window_attention(x, params, window_size, num_heads,
                           add_token=add_token, mask=mask)
    out = jax.block_until_ready(out)

    ref = jax.block_until_ready(
        window_attention_ref(x, params, window_size, num_heads,
                             add_token=add_token, mask=mask))

    assert out.shape == (B_, N, C) and out.dtype == jnp.float32
    assert bool(jnp.all(jnp.isfinite(out)))
    max_err = float(jnp.max(jnp.abs(out - ref)))
    assert max_err < 5e-2, f"max abs err vs reference: {max_err}"
    print("KERNEL_OK")
</pallas_src>

<mosaic_0001>
module attributes {stable_mosaic.version = 11 : i64} {
  func.func @_window_attn_kernel(%arg0: i32, %arg1: i32, %arg2: memref<1x18x32xf32, #tpu.memory_space<vmem>>, %arg3: memref<1x32x8xf32, #tpu.memory_space<vmem>>, %arg4: memref<1x32x8xf32, #tpu.memory_space<vmem>>, %arg5: memref<1x32x8xf32, #tpu.memory_space<vmem>>, %arg6: memref<1x1x8xf32, #tpu.memory_space<vmem>>, %arg7: memref<1x1x8xf32, #tpu.memory_space<vmem>>, %arg8: memref<1x1x8xf32, #tpu.memory_space<vmem>>, %arg9: memref<1x1x18x18xf32, #tpu.memory_space<vmem>>, %arg10: memref<1x8x32xf32, #tpu.memory_space<vmem>>, %arg11: memref<1x32xf32, #tpu.memory_space<vmem>>, %arg12: memref<1x18x32xf32, #tpu.memory_space<vmem>>, %arg13: memref<18x32xf32, #tpu.memory_space<vmem>>) attributes {dimension_semantics = [#tpu.dimension_semantics<parallel>, #tpu.dimension_semantics<arbitrary>], iteration_bounds = array<i64: 8, 4>, scalar_prefetch = 0 : i64, scratch_operands = 1 : i64, tpu.core_type = #tpu.core_type<tc>, window_params = [{transform_indices = @transform_0, window_bounds = array<i64: 1, 18, 32>}, {transform_indices = @transform_1, window_bounds = array<i64: 1, 32, 8>}, {transform_indices = @transform_2, window_bounds = array<i64: 1, 32, 8>}, {transform_indices = @transform_3, window_bounds = array<i64: 1, 32, 8>}, {transform_indices = @transform_4, window_bounds = array<i64: 1, 1, 8>}, {transform_indices = @transform_5, window_bounds = array<i64: 1, 1, 8>}, {transform_indices = @transform_6, window_bounds = array<i64: 1, 1, 8>}, {transform_indices = @transform_7, window_bounds = array<i64: 1, 1, 18, 18>}, {transform_indices = @transform_8, window_bounds = array<i64: 1, 8, 32>}, {pipeline_mode = #tpu.pipeline_mode<synchronous>, transform_indices = @transform_9, window_bounds = array<i64: 1, 32>}, {transform_indices = @transform_10, window_bounds = array<i64: 1, 18, 32>}]} {
    %c0 = arith.constant 0 : index
    %c0_0 = arith.constant 0 : index
    %c0_1 = arith.constant 0 : index
    %0 = vector.load %arg2[%c0, %c0_0, %c0_1] : memref<1x18x32xf32, #tpu.memory_space<vmem>>, vector<1x18x32xf32>
    %1 = vector.shape_cast %0 : vector<1x18x32xf32> to vector<18x32xf32>
    %c0_2 = arith.constant 0 : index
    %c0_3 = arith.constant 0 : index
    %c0_4 = arith.constant 0 : index
    %2 = vector.load %arg3[%c0_2, %c0_3, %c0_4] : memref<1x32x8xf32, #tpu.memory_space<vmem>>, vector<1x32x8xf32>
    %3 = vector.shape_cast %2 : vector<1x32x8xf32> to vector<32x8xf32>
    %cst = arith.constant dense<0.000000e+00> : vector<18x8xf32>
    %4 = tpu.matmul %1, %3, %cst {dimension_numbers = #tpu.dot_dimension_numbers<[1], [0], [0], [1], [0, 0, 1, 1], [], []>} : vector<18x32xf32>, vector<32x8xf32>, vector<18x8xf32> -> vector<18x8xf32>
    %c0_5 = arith.constant 0 : index
    %c0_6 = arith.constant 0 : index
    %c0_7 = arith.constant 0 : index
    %5 = vector.load %arg6[%c0_5, %c0_6, %c0_7] : memref<1x1x8xf32, #tpu.memory_space<vmem>>, vector<1x1x8xf32>
    %6 = vector.shape_cast %5 : vector<1x1x8xf32> to vector<1x8xf32>
    %7 = vector.broadcast %6 : vector<1x8xf32> to vector<18x8xf32>
    %8 = arith.addf %4, %7 : vector<18x8xf32>
    %c0_8 = arith.constant 0 : index
    %c0_9 = arith.constant 0 : index
    %c0_10 = arith.constant 0 : index
    %9 = vector.load %arg4[%c0_8, %c0_9, %c0_10] : memref<1x32x8xf32, #tpu.memory_space<vmem>>, vector<1x32x8xf32>
    %10 = vector.shape_cast %9 : vector<1x32x8xf32> to vector<32x8xf32>
    %cst_11 = arith.constant dense<0.000000e+00> : vector<18x8xf32>
    %11 = tpu.matmul %1, %10, %cst_11 {dimension_numbers = #tpu.dot_dimension_numbers<[1], [0], [0], [1], [0, 0, 1, 1], [], []>} : vector<18x32xf32>, vector<32x8xf32>, vector<18x8xf32> -> vector<18x8xf32>
    %c0_12 = arith.constant 0 : index
    %c0_13 = arith.constant 0 : index
    %c0_14 = arith.constant 0 : index
    %12 = vector.load %arg7[%c0_12, %c0_13, %c0_14] : memref<1x1x8xf32, #tpu.memory_space<vmem>>, vector<1x1x8xf32>
    %13 = vector.shape_cast %12 : vector<1x1x8xf32> to vector<1x8xf32>
    %14 = vector.broadcast %13 : vector<1x8xf32> to vector<18x8xf32>
    %15 = arith.addf %11, %14 : vector<18x8xf32>
    %c0_15 = arith.constant 0 : index
    %c0_16 = arith.constant 0 : index
    %c0_17 = arith.constant 0 : index
    %16 = vector.load %arg5[%c0_15, %c0_16, %c0_17] : memref<1x32x8xf32, #tpu.memory_space<vmem>>, vector<1x32x8xf32>
    %17 = vector.shape_cast %16 : vector<1x32x8xf32> to vector<32x8xf32>
    %cst_18 = arith.constant dense<0.000000e+00> : vector<18x8xf32>
    %18 = tpu.matmul %1, %17, %cst_18 {dimension_numbers = #tpu.dot_dimension_numbers<[1], [0], [0], [1], [0, 0, 1, 1], [], []>} : vector<18x32xf32>, vector<32x8xf32>, vector<18x8xf32> -> vector<18x8xf32>
    %c0_19 = arith.constant 0 : index
    %c0_20 = arith.constant 0 : index
    %c0_21 = arith.constant 0 : index
    %19 = vector.load %arg8[%c0_19, %c0_20, %c0_21] : memref<1x1x8xf32, #tpu.memory_space<vmem>>, vector<1x1x8xf32>
    %20 = vector.shape_cast %19 : vector<1x1x8xf32> to vector<1x8xf32>
    %21 = vector.broadcast %20 : vector<1x8xf32> to vector<18x8xf32>
    %22 = arith.addf %18, %21 : vector<18x8xf32>
    %cst_22 = arith.constant 0.353553385 : f32
    %23 = vector.broadcast %cst_22 : f32 to vector<18x8xf32>
    %24 = arith.mulf %8, %23 : vector<18x8xf32>
    %cst_23 = arith.constant dense<0.000000e+00> : vector<18x18xf32>
    %25 = tpu.matmul %24, %15, %cst_23 {dimension_numbers = #tpu.dot_dimension_numbers<[1], [1], [0], [0], [0, 0, 1, 0], [], []>} : vector<18x8xf32>, vector<18x8xf32>, vector<18x18xf32> -> vector<18x18xf32>
    %c0_24 = arith.constant 0 : index
    %c0_25 = arith.constant 0 : index
    %c0_26 = arith.constant 0 : index
    %c0_27 = arith.constant 0 : index
    %26 = vector.load %arg9[%c0_24, %c0_25, %c0_26, %c0_27] : memref<1x1x18x18xf32, #tpu.memory_space<vmem>>, vector<1x1x18x18xf32>
    %27 = vector.shape_cast %26 : vector<1x1x18x18xf32> to vector<18x18xf32>
    %28 = arith.addf %25, %27 : vector<18x18xf32>
    %cst_28 = arith.constant dense<0xFF800000> : vector<18xf32>
    %29 = vector.multi_reduction <maximumf>, %28, %cst_28 [1] : vector<18x18xf32> to vector<18xf32>
    %30 = vector.shape_cast %29 : vector<18xf32> to vector<18x1xf32>
    %31 = vector.broadcast %30 : vector<18x1xf32> to vector<18x18xf32>
    %32 = arith.subf %28, %31 : vector<18x18xf32>
    %33 = math.exp %32 : vector<18x18xf32>
    %cst_29 = arith.constant dense<0.000000e+00> : vector<18xf32>
    %34 = vector.multi_reduction <add>, %33, %cst_29 [1] : vector<18x18xf32> to vector<18xf32>
    %35 = vector.shape_cast %34 : vector<18xf32> to vector<18x1xf32>
    %36 = vector.broadcast %35 : vector<18x1xf32> to vector<18x18xf32>
    %37 = arith.divf %33, %36 : vector<18x18xf32>
    %cst_30 = arith.constant dense<0.000000e+00> : vector<18x8xf32>
    %38 = tpu.matmul %37, %22, %cst_30 {dimension_numbers = #tpu.dot_dimension_numbers<[1], [0], [0], [1], [0, 0, 1, 1], [], []>} : vector<18x18xf32>, vector<18x8xf32>, vector<18x8xf32> -> vector<18x8xf32>
    %c0_31 = arith.constant 0 : index
    %c0_32 = arith.constant 0 : index
    %c0_33 = arith.constant 0 : index
    %39 = vector.load %arg10[%c0_31, %c0_32, %c0_33] : memref<1x8x32xf32, #tpu.memory_space<vmem>>, vector<1x8x32xf32>
    %40 = vector.shape_cast %39 : vector<1x8x32xf32> to vector<8x32xf32>
    %cst_34 = arith.constant dense<0.000000e+00> : vector<18x32xf32>
    %41 = tpu.matmul %38, %40, %cst_34 {dimension_numbers = #tpu.dot_dimension_numbers<[1], [0], [0], [1], [0, 0, 1, 1], [], []>} : vector<18x8xf32>, vector<8x32xf32>, vector<18x32xf32> -> vector<18x32xf32>
    %c0_i32 = arith.constant 0 : i32
    %42 = arith.cmpi eq, %arg1, %c0_i32 : i32
    %43 = arith.extui %42 : i1 to i32
    %c0_i32_35 = arith.constant 0 : i32
    %44 = arith.cmpi ne, %43, %c0_i32_35 : i32
    scf.if %44 {
      %cst_41 = arith.constant 0.000000e+00 : f32
      %51 = vector.broadcast %cst_41 : f32 to vector<18x32xf32>
      %c0_42 = arith.constant 0 : index
      %c0_43 = arith.constant 0 : index
      %52 = vector.load %arg13[%c0_42, %c0_43] : memref<18x32xf32, #tpu.memory_space<vmem>>, vector<18x32xf32>
      tpu.vector_store %arg13[%c0_42, %c0_43], %51 {strides = array<i32>} : memref<18x32xf32, #tpu.memory_space<vmem>>, vector<18x32xf32>,
    } else {
    }
    %c0_36 = arith.constant 0 : index
    %c0_37 = arith.constant 0 : index
    %45 = vector.load %arg13[%c0_36, %c0_37] : memref<18x32xf32, #tpu.memory_space<vmem>>, vector<18x32xf32>
    %46 = arith.addf %45, %41 : vector<18x32xf32>
    %c0_38 = arith.constant 0 : index
    %c0_39 = arith.constant 0 : index
    %47 = vector.load %arg13[%c0_38, %c0_39] : memref<18x32xf32, #tpu.memory_space<vmem>>, vector<18x32xf32>
    tpu.vector_store %arg13[%c0_38, %c0_39], %46 {strides = array<i32>} : memref<18x32xf32, #tpu.memory_space<vmem>>, vector<18x32xf32>,
    %c3_i32 = arith.constant 3 : i32
    %48 = arith.cmpi eq, %arg1, %c3_i32 : i32
    %49 = arith.extui %48 : i1 to i32
    %c0_i32_40 = arith.constant 0 : i32
    %50 = arith.cmpi ne, %49, %c0_i32_40 : i32
    scf.if %50 {
      %c0_41 = arith.constant 0 : index
      %c0_42 = arith.constant 0 : index
      %51 = vector.load %arg13[%c0_41, %c0_42] : memref<18x32xf32, #tpu.memory_space<vmem>>, vector<18x32xf32>
      %c0_43 = arith.constant 0 : index
      %c0_44 = arith.constant 0 : index
      %52 = vector.load %arg11[%c0_43, %c0_44] : memref<1x32xf32, #tpu.memory_space<vmem>>, vector<1x32xf32>
      %53 = vector.broadcast %52 : vector<1x32xf32> to vector<18x32xf32>
      %54 = arith.addf %51, %53 : vector<18x32xf32>
      %c0_45 = arith.constant 0 : index
      %c0_46 = arith.constant 0 : index
      %c0_47 = arith.constant 0 : index
      %55 = vector.load %arg12[%c0_45, %c0_46, %c0_47] : memref<1x18x32xf32, #tpu.memory_space<vmem>>, vector<1x18x32xf32>
      %56 = vector.shape_cast %55 : vector<1x18x32xf32> to vector<18x32xf32>
      %57 = vector.shape_cast %54 : vector<18x32xf32> to vector<1x18x32xf32>
      tpu.vector_store %arg12[%c0_45, %c0_46, %c0_47], %57 {strides = array<i32>} : memref<1x18x32xf32, #tpu.memory_space<vmem>>, vector<1x18x32xf32>,
    } else {
    }
    return
  }
  func.func @transform_0(%arg0: i32, %arg1: i32) -> (i32, i32, i32) {
    %c0_i32 = arith.constant 0 : i32
    %c0_i32_0 = arith.constant 0 : i32
    %c0_i32_1 = arith.constant 0 : i32
    return %arg0, %c0_i32, %c0_i32_0 : i32, i32, i32
  }
  func.func @transform_1(%arg0: i32, %arg1: i32) -> (i32, i32, i32) {
    %c0_i32 = arith.constant 0 : i32
    %c0_i32_0 = arith.constant 0 : i32
    %c0_i32_1 = arith.constant 0 : i32
    return %arg1, %c0_i32, %c0_i32_0 : i32, i32, i32
  }
  func.func @transform_2(%arg0: i32, %arg1: i32) -> (i32, i32, i32) {
    %c0_i32 = arith.constant 0 : i32
    %c0_i32_0 = arith.constant 0 : i32
    %c0_i32_1 = arith.constant 0 : i32
    return %arg1, %c0_i32, %c0_i32_0 : i32, i32, i32
  }
  func.func @transform_3(%arg0: i32, %arg1: i32) -> (i32, i32, i32) {
    %c0_i32 = arith.constant 0 : i32
    %c0_i32_0 = arith.constant 0 : i32
    %c0_i32_1 = arith.constant 0 : i32
    return %arg1, %c0_i32, %c0_i32_0 : i32, i32, i32
  }
  func.func @transform_4(%arg0: i32, %arg1: i32) -> (i32, i32, i32) {
    %c0_i32 = arith.constant 0 : i32
    %c0_i32_0 = arith.constant 0 : i32
    %c0_i32_1 = arith.constant 0 : i32
    return %arg1, %c0_i32, %c0_i32_0 : i32, i32, i32
  }
  func.func @transform_5(%arg0: i32, %arg1: i32) -> (i32, i32, i32) {
    %c0_i32 = arith.constant 0 : i32
    %c0_i32_0 = arith.constant 0 : i32
    %c0_i32_1 = arith.constant 0 : i32
    return %arg1, %c0_i32, %c0_i32_0 : i32, i32, i32
  }
  func.func @transform_6(%arg0: i32, %arg1: i32) -> (i32, i32, i32) {
    %c0_i32 = arith.constant 0 : i32
    %c0_i32_0 = arith.constant 0 : i32
    %c0_i32_1 = arith.constant 0 : i32
    return %arg1, %c0_i32, %c0_i32_0 : i32, i32, i32
  }
  func.func @transform_7(%arg0: i32, %arg1: i32) -> (i32, i32, i32, i32) {
    %c4_i32 = arith.constant 4 : i32
    %c0_i32 = arith.constant 0 : i32
    %0 = arith.cmpi eq, %c4_i32, %c0_i32 : i32
    %c1_i32 = arith.constant 1 : i32
    %1 = arith.select %0, %c1_i32, %c4_i32 : i32
    %2 = arith.remsi %arg0, %1 : i32
    %c0_i32_0 = arith.constant 0 : i32
    %3 = arith.cmpi ne, %2, %c0_i32_0 : i32
    %c0_i32_1 = arith.constant 0 : i32
    %4 = arith.cmpi slt, %2, %c0_i32_1 : i32
    %c0_i32_2 = arith.constant 0 : i32
    %5 = arith.cmpi slt, %1, %c0_i32_2 : i32
    %6 = arith.xori %4, %5 : i1
    %7 = arith.andi %6, %3 : i1
    %8 = arith.addi %2, %1 : i32
    %9 = arith.select %7, %8, %2 : i32
    %c0_i32_3 = arith.constant 0 : i32
    %c0_i32_4 = arith.constant 0 : i32
    %c0_i32_5 = arith.constant 0 : i32
    return %9, %arg1, %c0_i32_3, %c0_i32_4 : i32, i32, i32, i32
  }
  func.func @transform_8(%arg0: i32, %arg1: i32) -> (i32, i32, i32) {
    %c0_i32 = arith.constant 0 : i32
    %c0_i32_0 = arith.constant 0 : i32
    %c0_i32_1 = arith.constant 0 : i32
    return %arg1, %c0_i32, %c0_i32_0 : i32, i32, i32
  }
  func.func @transform_9(%arg0: i32, %arg1: i32) -> (i32, i32) {
    %c0_i32 = arith.constant 0 : i32
    %c0_i32_0 = arith.constant 0 : i32
    %c0_i32_1 = arith.constant 0 : i32
    return %c0_i32, %c0_i32_0 : i32, i32
  }
  func.func @transform_10(%arg0: i32, %arg1: i32) -> (i32, i32, i32) {
    %c0_i32 = arith.constant 0 : i32
    %c0_i32_0 = arith.constant 0 : i32
    %c0_i32_1 = arith.constant 0 : i32
    return %arg0, %c0_i32, %c0_i32_0 : i32, i32, i32
  }
}

</mosaic_0001>

<bundles_post_ra>
// kernel: tpu_custom_call.1
= control target key start
LH: loop header
LB: loop body
LE: loop exit
PB: predicated region body
PF: predicated region fallthrough
CT: control target
= control target key end

     0   :  { %s1760_s13 = smov 0   ;;  %s1762_s14 = smov 0   ;;  %s1969_s0 = inlined_call_operand.vmem [shape: f32[8,18,32], index: 0, kind: input, shape index: {}]   ;;  %s1970_s1 = inlined_call_operand.vmem [shape: f32[4,32,8], index: 1, kind: input, shape index: {}]   ;;  %s1971_s2 = inlined_call_operand.vmem [shape: f32[4,32,8], index: 2, kind: input, shape index: {}]   ;;  %s1972_s3 = inlined_call_operand.vmem [shape: f32[4,32,8], index: 3, kind: input, shape index: {}]   ;;  %s1973_s4 = inlined_call_operand.vmem [shape: f32[4,1,8], index: 4, kind: input, shape index: {}]   ;;  %s1974_s5 = inlined_call_operand.vmem [shape: f32[4,1,8], index: 5, kind: input, shape index: {}]   ;;  %s1975_s6 = inlined_call_operand.vmem [shape: f32[4,1,8], index: 6, kind: input, shape index: {}]   ;;  %s1976_s7 = inlined_call_operand.vmem [shape: f32[4,4,18,18], index: 7, kind: input, shape index: {}]   ;;  %s1977_s8 = inlined_call_operand.vmem [shape: f32[4,8,32], index: 8, kind: input, shape index: {}]   ;;  %s1978_s9 = inlined_call_operand.vmem [shape: f32[1,32], index: 9, kind: input, shape index: {}]   ;;  %s1979_s10 = inlined_call_operand.vmem [shape: f32[8,18,32], index: 10, kind: output, shape index: {}]  }
   0x1   :  { %1980 = sst [smem:[#allocation3_spill]] %s1969_s0  ;;  %s1764_s15 = smov 0  }
   0x2   :  { %s1766_s16 = smov 0   ;;  %s1768_s17 = smov 0  }
   0x3 LB: > { %s29_s18 = sadd.s32 1, %s1692_s15  ;;  %s32_s19 = sadd.s32 1, %s1696_s16  ;;  %s1700_s17 = sphi %s1768_s17, %s20_s17   ;;  %s1696_s16 = sphi %s1766_s16, %s1985_s16   ;;  %s1692_s15 = sphi %s1764_s15, %s1984_s15   ;;  %s1688_s14 = sphi %s1762_s14, %s1983_s14   ;;  %s1684_s13 = sphi %s1760_s13, %s1982_s13  }
   0x4   : > { %p30_p0 = scmp.ge.s32.totalorder %s29_s18, 4  ;;  %p1428_p1 = scmp.ge.s32.totalorder %s1700_s17, 1 }
   0x5   : > { %p451_p2 = scmp.lt.s32.totalorder %s1700_s17, 33 }
   0x6   : > { %s1987_s18 = smov (%p30_p0, %s29_s18), 0  ;;  %s1989_s19 = smov (!%p30_p0, %s32_s19), %s1696_s16 }
   0x7   : > { %p452_p3 = pnand %p1428_p1, %p451_p2  ;;  %p34_p4 = scmp.ge.s32.totalorder %s1989_s19, 8 }
   0x8   : > { %p543_p5 = scmp.lt.s32.totalorder (!%p452_p3), %s1684_s13, 3  ;;  %p538_p6 = scmp.lt.s32.totalorder (!%p452_p3), %s1688_s14, 7 }
   0x9   : > { %s1991_s19 = smov (%p34_p4, %s1989_s19), 0  ;;  %455 = sbr.rel (%p452_p3) target bundleno = 1166 (0x48e), region = 60 }
   0xa   : > { %s1981_s0 = sld [smem:[#allocation3_spill]] (!%p452_p3)  ;;  %p567_p7 = scmp.lt.s32.totalorder (!%p452_p3), %s1688_s14, 0 }
   0xb   : > { %p1467_p10 = scmp.ne.s32.totalorder (!%p452_p3), %s1684_s13, 0 }
   0xe   : > { %v1702_v0 = vmov 0.0   ;;  %vm1703_vm0 = vmmov 0   ;;  %s1800_s20 = scalar_select %p543_p5, %s1684_s13, 3  ;;  %vm623_vm1 = vcmask 261120   ;;  %vm901_vm2 = vcmask 64512  }
   0xf   : > { %1529 = vmatprep.subr.mxu1 %v1702_v0  ;;  %1537 = vmatprep.mubr.msk.f32.mxu1 %vm1703_vm0, %v1702_v0  ;;  %s539_s21 = scalar_select %p538_p6, %s1688_s14, 7  ;;  %vm1000_vm3 = vcmask 146432   ;;  %vm1007_vm4 = vcmask 140288   ;;  %vm1044_vm5 = vcmask 1041408  }
  0x10   : > { %1512 = vmatprep.subr.mxu0 %v1702_v0  ;;  %1520 = vmatprep.mubr.msk.f32.mxu0 %vm1703_vm0, %v1702_v0  ;;  %s1807_s22 = sshll.u32 %s1800_s20, 5  ;;  %s563_s27 = scalar_lea.vmem %s1974_s5, %s1800_s20 }
  0x11   : > { %s552_s25 = scalar_lea.vmem %s1971_s2, %s1807_s22  ;;  %s1604_s26 = smul.u32 24, %s539_s21  ;;  %v1446_v20 = vld [vmem:[%s563_s27] ss:$0 sm:$0xff] }
  0x12   : > { %v716_v1 = vld [vmem:[%s552_s25 + $0x18] sm:$0xff]  ;;  %v715_v2 = vld [vmem:[%s552_s25 + $0x10] sm:$0xff]  ;;  %s547_s29 = scalar_lea.vmem %s1970_s1, %s1807_s22  ;;  %v714_v5 = vld [vmem:[%s552_s25 + $0x8] sm:$0xff]  ;;  %s560_s30 = scalar_lea.vmem %s1973_s4, %s1800_s20 }
  0x13   : > { %1530 = vmatpush3.msra.mxu1 %v716_v1  ;;  %s1820_s12 = scalar_lea.vmem %s1979_s10, %s1604_s26  ;;  %v615_v3 = vld [vmem:[%s547_s29 + $0x18] sm:$0xff]  ;;  %v614_v4 = vld [vmem:[%s547_s29 + $0x10] sm:$0xff]  ;;  %s542_s21 = scalar_lea.vmem %s1981_s0, %s1604_s26  ;;  %v613_v6 = vld [vmem:[%s547_s29 + $0x8] sm:$0xff] }
  0x14   : > { %1531 = vmatprep.subr.mxu1 %v1702_v0  ;;  %1513 = vmatpush3.msra.mxu0 %v615_v3  ;;  %v713_v7 = vld [vmem:[%s552_s25] sm:$0xff]  ;;  %v1837_v10 = vld [vmem:[%s542_s21 + $0x8] sm:$0xff]  ;;  %v611_v11 = vld [vmem:[%s542_s21 + $0x10] sm:$0x3]  ;;  %s557_s24 = scalar_lea.vmem %s1972_s3, %s1807_s22  ;;  %s568_s22 = ssub.s32 0, %s1688_s14 }
  0x15   : > { %1532 = vmatpush3.msra.mxu1 %v715_v2  ;;  %1514 = vmatprep.subr.mxu0 %v1702_v0  ;;  %v1828_v8 = vld [vmem:[%s542_s21] sm:$0xff]  ;;  %v807_v35 = vld [vmem:[%s557_s24 + $0x18] sm:$0xff]  ;;  %v806_v36 = vld [vmem:[%s557_s24 + $0x10] sm:$0xff]  ;;  %s1436_s21 = smin.u32 %s1688_s14, %s568_s22  ;;  %s1605_s28 = smul.u32 3, %s1800_s20 }
  0x16   : > { %1533 = vmatprep.subr.mxu1 %v1702_v0  ;;  %1515 = vmatpush3.msra.mxu0 %v614_v4  ;;  %v612_v9 = vld [vmem:[%s547_s29] sm:$0xff]  ;;  %v805_v37 = vld [vmem:[%s557_s24 + $0x8] sm:$0xff]  ;;  %s570_s25 = sand.u32 3, %s1436_s21   ;;  %s566_s21 = scalar_lea.vmem %s1975_s6, %s1800_s20 }
  0x17   : > { %1534 = vmatpush3.msra.mxu1 %v714_v5  ;;  %1516 = vmatprep.subr.mxu0 %v1702_v0  ;;  %v1442_v25 = vld [vmem:[%s560_s30] ss:$0 sm:$0xff]  ;;  %s571_s26 = ssub.s32 0, %s570_s25 }
  0x18   : > { %1535 = vmatprep.subr.mxu1 %v1702_v0  ;;  %1517 = vmatpush3.msra.mxu0 %v613_v6  ;;  %v804_v38 = vld [vmem:[%s557_s24] sm:$0xff]  ;;  %s1993_s26 = smov (!%p567_p7, %s571_s26), %s570_s25 }
  0x19   : > { %1536 = vmatpush3.msra.mxu1 %v713_v7  ;;  %1518 = vmatprep.subr.mxu0 %v1702_v0  ;;  %p1438_p8 = scmp.lt.s32.totalorder %s1993_s26, 0  ;;  %s577_s27 = sadd.s32 4, %s1993_s26  ;;  %v1450_v57 = vld [vmem:[%s566_s21] ss:$0 sm:$0xff] }
  0x1a   : > { %1538 = vmatmul.mubr.msk.f32.vlgmr.msra.gmra.mxu1 %vm623_vm1, %v1828_v8  ;;  %1519 = vmatpush3.msra.mxu0 %v612_v9 }
  0x1b   : > { %1540 = vmatprep.mubr.msk.f32.mxu1 %vm1703_vm0, %v1702_v0  ;;  %1521 = vmatmul.mubr.msk.f32.vlgmr.msra.gmra.mxu0 %vm623_vm1, %v1828_v8  ;;  %s1995_s27 = smov (!%p1438_p8, %s577_s27), %s1993_s26 }
  0x1c   : > { %1523 = vmatprep.mubr.msk.f32.mxu0 %vm1703_vm0, %v1702_v0  ;;  %1563 = vmatprep.subr.mxu1 %v1702_v0  ;;  %p579_p9 = scmp.lt.s32.totalorder %s1995_s27, 3 }
  0x1d   : > { %1546 = vmatprep.subr.mxu0 %v1702_v0 }
  0x1e   : > { %1541 = vmatmul.mubr.msk.f32.gmra.mxu1 %vm623_vm1, %v1837_v10  ;;  %1547 = vmatpush3.msra.mxu0 %v807_v35  ;;  %s1997_s27 = smov (!%p579_p9, %s1995_s27), 3 }
  0x1f   : > { %1543 = vmatprep.mubr.msk.f32.mxu1 %vm1703_vm0, %v1702_v0  ;;  %1524 = vmatmul.mubr.msk.f32.gmra.mxu0 %vm623_vm1, %v1837_v10  ;;  %s1606_s29 = smul.u32 12, %s1997_s27 }
  0x20   : > { %1526 = vmatprep.mubr.msk.f32.mxu0 %vm1703_vm0, %v1702_v0  ;;  %1548 = vmatprep.subr.mxu0 %v1702_v0 }
  0x21   : > { %1549 = vmatpush3.msra.mxu0 %v806_v36  ;;  %s585_s30 = sadd.s32 %s1606_s29, %s1605_s28 }
  0x22   : > { %1544 = vmatmul.mubr.msk.f32.gmra.mxu1 %vm623_vm1, %v611_v11  ;;  %1550 = vmatprep.subr.mxu0 %v1702_v0  ;;  %s1439_s11 = sshll.u32 %s585_s30, 3 }
  0x23   : > { %1527 = vmatmul.mubr.msk.f32.gmra.mxu0 %vm623_vm1, %v611_v11  ;;  %1569 = vmatprep.mubr.msk.f32.mxu1 %vm1703_vm0, %v1702_v0  ;;  %s587_s0 = scalar_lea.vmem %s1976_s7, %s1439_s11 }
  0x24   : > { %1554 = vmatprep.mubr.msk.f32.mxu0 %vm1703_vm0, %v1702_v0  ;;  %1551 = vmatpush3.msra.mxu0 %v805_v37  ;;  %v898_v39 = vld [vmem:[%s587_s0] sm:$0xff]  ;;  %v899_v43 = vld [vmem:[%s587_s0 + $0x8] sm:$0xff]  ;;  %v900_v48 = vld [vmem:[%s587_s0 + $0x10] sm:$0x3]  ;;  %s1440_s0 = sshll.u32 %s1800_s20, 3 }
  0x25   : > { %1552 = vmatprep.subr.mxu0 %v1702_v0  ;;  %s603_s27 = scalar_lea.vmem %s1977_s8, %s1440_s0 }
  0x26   : > { %1553 = vmatpush3.msra.mxu0 %v804_v38 }
  0x27   : > { %1555 = vmatmul.mubr.msk.f32.vlgmr.msra.gmra.mxu0 %vm623_vm1, %v1828_v8  ;;  %1578 = vmatprep.subr.mxu0 %v1702_v0 }
  0x28   : > { %1557 = vmatprep.mubr.msk.f32.mxu0 %vm1703_vm0, %v1702_v0 }
  0x2b   : > { %1558 = vmatmul.mubr.msk.f32.gmra.mxu0 %vm623_vm1, %v1837_v10 }
  0x2c   : > { %1560 = vmatprep.mubr.msk.f32.mxu0 %vm1703_vm0, %v1702_v0 }
  0x2f   : > { %1561 = vmatmul.mubr.msk.f32.gmra.mxu0 %vm623_vm1, %v611_v11 }
  0x30   : > { %1584 = vmatprep.mubr.msk.f32.mxu0 %vm1703_vm0, %v1702_v0 }
  0xda   : > { %v790_v12 = vpop.f32.mrf.mxu1 }
  0xdb   : > { %v699_v13 = vpop.f32.mrf.mxu0  ;;  %v791_v29 = vadd.f32 %v1446_v20, %v790_v12 }
  0xdc   : > { %v1539_v14 = vpop.f32.mrf.mxu1  ;;  %v700_v28 = vadd.f32 %v1442_v25, %v699_v13 }
  0xdd   : > { %v1522_v15 = vpop.f32.mrf.mxu0 }
  0xde   : > { %v795_v16 = vpop.f32.mrf.mxu1  ;;  %v895_v30 = vmul.f32 0.35355338, %v700_v28 }
  0xdf   : > { %v704_v17 = vpop.f32.mrf.mxu0  ;;  %v796_v27 = vadd.f32 %v1446_v20, %v795_v16  ;;  %v1128_v16 = vld [vmem:[%s603_s27] sm:$0xff] }
  0xe0   : > { %v1542_v18 = vpop.f32.mrf.mxu1  ;;  %v705_v31 = vadd.f32 %v1442_v25, %v704_v17 }
  0xe1   : > { %v1525_v19 = vpop.f32.mrf.mxu0 }
  0xe2   : > { %v800_v21 = vpop.f32.mrf.mxu1  ;;  %v896_v32 = vmul.f32 0.35355338, %v705_v31 }
  0xe3   : > { %v801_v22 = vadd.f32 %v1446_v20, %v800_v21  ;;  %v709_v23 = vpop.f32.mrf.mxu0 }
  0xe4   : > { %v1545_v24 = vpop.f32.mrf.mxu1  ;;  %v710_v33 = vadd.f32 %v1442_v25, %v709_v23 }
  0xe5   : > { %1564 = vmatpush3.xpose.msk.msra.mxu1 %vm901_vm2, %v801_v22  ;;  %v1528_v26 = vpop.f32.mrf.mxu0 }
  0xe6   : > { %1565 = vmatprep.subr.mxu1 %v1702_v0  ;;  %v897_v34 = vmul.f32 0.35355338, %v710_v33 }
  0xe7   : > { %v881_v54 = vpop.f32.mrf.mxu0 }
  0xe8   : > { %v882_v63 = vadd.f32 %v1450_v57, %v881_v54 }
  0xe9   : > { %1566 = vmatpush3.xpose.msk.msra.mxu1 %vm901_vm2, %v796_v27  ;;  %v1556_v55 = vpop.f32.mrf.mxu0 }
  0xea   : > { %1567 = vmatprep.subr.mxu1 %v1702_v0 }
  0xeb   : > { %v886_v56 = vpop.f32.mrf.mxu0 }
  0xec   : > { %v887_v60 = vadd.f32 %v1450_v57, %v886_v56 }
  0xed   : > { %1568 = vmatpush3.xpose.msk.msra.mxu1 %vm901_vm2, %v791_v29  ;;  %v1559_v58 = vpop.f32.mrf.mxu0 }
  0xee   : > { %1593 = vmatprep.subr.mxu1 %v1702_v0 }
  0xef   : > { %v891_v59 = vpop.f32.mrf.mxu0 }
  0xf0   : > { %1570 = vmatmul.mubr.msk.f32.vlgmr.msra.gmra.mxu1 %vm901_vm2, %v895_v30  ;;  %v892_v61 = vadd.f32 %v1450_v57, %v891_v59 }
  0xf1   : > { %1572 = vmatprep.mubr.msk.f32.mxu1 %vm1703_vm0, %v1702_v0  ;;  %v1562_v62 = vpop.f32.mrf.mxu0  ;;  %1594 = vmatpush3.msra.mxu1 %v1128_v16 }
  0xf2   : > { %1579 = vmatpush3.msk.msra.mxu0 %vm1044_vm5, %v892_v61 }
  0xf3   : > { %1580 = vmatprep.subr.mxu0 %v1702_v0 }
  0xf4   : > { %1573 = vmatmul.mubr.msk.f32.gmra.mxu1 %vm901_vm2, %v896_v32  ;;  %1581 = vmatpush3.msra.mxu0 %v887_v60 }
  0xf5   : > { %1575 = vmatprep.mubr.msk.f32.mxu1 %vm1703_vm0, %v1702_v0  ;;  %1582 = vmatprep.subr.mxu0 %v1702_v0 }
  0xf6   : > { %1583 = vmatpush3.msra.mxu0 %v882_v63 }
  0xf8   : > { %1576 = vmatmul.mubr.msk.f32.gmra.mxu1 %vm901_vm2, %v897_v34 }
  0xf9   : > { %1595 = vmatprep.mubr.msk.f32.mxu1 %vm1703_vm0, %v1702_v0 }
 0x1b0   : > { %v986_v40 = vpop.f32.mrf.mxu1 }
 0x1b1   : > { %v987_v41 = vadd.f32 %v986_v40, %v898_v39 }
 0x1b2   : > { %v1571_v42 = vpop.f32.mrf.mxu1 }
 0x1b3   : > { %v1001_v44 = vsel %vm1000_vm3, %v987_v41, -inf }
 0x1b4   : > { %1002 = vmax.xlane.f32.xlu0 %v1001_v44  ;;  %v991_v45 = vpop.f32.mrf.mxu1 }
 0x1b5   : > { %v992_v46 = vadd.f32 %v991_v45, %v899_v43 }
 0x1b6   : > { %v1574_v47 = vpop.f32.mrf.mxu1 }
 0x1b7   : > { %v1004_v49 = vsel %vm1000_vm3, %v992_v46, -inf }
 0x1b8   : > { %1005 = vmax.xlane.f32.xlu0 %v1004_v49  ;;  %v996_v50 = vpop.f32.mrf.mxu1 }
 0x1b9   : > { %v997_v51 = vadd.f32 %v996_v50, %v900_v48 }
 0x1ba   : > { %v1577_v52 = vpop.f32.mrf.mxu1 }
 0x1bb   : > { %v1008_v53 = vsel %vm1007_vm4, %v997_v51, -inf }
 0x1bc   : > { %1009 = vmax.xlane.f32.xlu1 %v1008_v53 }
 0x23d   : > { %v1003_v1 = vpop.xlane.xlu0 %1002 }
 0x23e   : > { %v1011_v2 = vsub.f32 %v987_v41, %v1003_v1 }
 0x240   : > { %v1014_v3 = vmul.f32 1.442695, %v1011_v2 }
 0x241   : > { %v1006_v4 = vpop.xlane.xlu0 %1005 }
 0x242   : > { %1650 = vpow2.f32 %v1014_v3  ;;  %v1012_v5 = vsub.f32 %v992_v46, %v1006_v4 }
 0x244   : > { %v1016_v6 = vmul.f32 1.442695, %v1012_v5 }
 0x245   : > { %v1010_v7 = vpop.xlane.xlu1 %1009 }
 0x246   : > { %1652 = vpow2.f32 %v1016_v6  ;;  %v1013_v8 = vsub.f32 %v997_v51, %v1010_v7 }
 0x248   : > { %v1018_v9 = vmul.f32 1.442695, %v1013_v8 }
 0x24a   : > { %1654 = vpow2.f32 %v1018_v9 }
 0x24f   : > { %v1651_v10 = vpop.eup %1650 }
 0x250   : > { %v1020_v11 = vsel %vm1000_vm3, %v1651_v10, 0.0 }
 0x251   : > { %1021 = vadd.xlane.f32.xlu1 %v1020_v11 }
 0x253   : > { %v1653_v12 = vpop.eup %1652 }
 0x254   : > { %v1023_v13 = vsel %vm1000_vm3, %v1653_v12, 0.0 }
 0x255   : > { %1024 = vadd.xlane.f32.xlu0 %v1023_v13 }
 0x257   : > { %v1655_v14 = vpop.eup %1654 }
 0x258   : > { %v1026_v15 = vsel %vm1007_vm4, %v1655_v14, 0.0 }
 0x259   : > { %1027 = vadd.xlane.f32.xlu1 %v1026_v15 }
 0x2da   : > { %v1022_v17 = vpop.xlane.xlu1 %1021 }
 0x2db   : > { %1656 = vrcp.f32 %v1022_v17 }
 0x2de   : > { %v1025_v18 = vpop.xlane.xlu0 %1024 }
 0x2df   : > { %1658 = vrcp.f32 %v1025_v18 }
 0x2e2   : > { %v1028_v19 = vpop.xlane.xlu1 %1027 }
 0x2e3   : > { %1660 = vrcp.f32 %v1028_v19 }
 0x2e8   : > { %v1657_v20 = vpop.eup %1656 }
 0x2e9   : > { %v1030_v21 = vmul.f32 %v1657_v20, %v1651_v10 }
 0x2eb   : > { %1585 = vmatmul.mubr.msk.f32.vlgmr.msra.gmra.mxu0 %vm1000_vm3, %v1030_v21 }
 0x2ec   : > { %v1659_v22 = vpop.eup %1658  ;;  %1587 = vmatprep.mubr.msk.f32.mxu0 %vm1703_vm0, %v1702_v0 }
 0x2ed   : > { %v1032_v23 = vmul.f32 %v1659_v22, %v1653_v12 }
 0x2ef   : > { %1588 = vmatmul.mubr.msk.f32.gmra.mxu0 %vm1000_vm3, %v1032_v23 }
 0x2f0   : > { %v1661_v24 = vpop.eup %1660  ;;  %1590 = vmatprep.mubr.msk.f32.mxu0 %vm1703_vm0, %v1702_v0 }
 0x2f1   : > { %v1034_v25 = vmul.f32 %v1661_v24, %v1655_v14 }
 0x2f3   : > { %1591 = vmatmul.mubr.msk.f32.gmra.mxu0 %vm1000_vm3, %v1034_v25 }
 0x3ab   : > { %v1114_v26 = vpop.f32.mrf.mxu0 }
 0x3ac   : > { %1596 = vmatmul.mubr.msk.f32.vlgmr.msra.gmra.mxu1 %vm901_vm2, %v1114_v26 }
 0x3ad   : > { %v1586_v27 = vpop.f32.mrf.mxu0  ;;  %1598 = vmatprep.mubr.msk.f32.mxu1 %vm1703_vm0, %v1702_v0 }
 0x3af   : > { %v1119_v28 = vpop.f32.mrf.mxu0 }
 0x3b0   : > { %1599 = vmatmul.mubr.msk.f32.gmra.mxu1 %vm901_vm2, %v1119_v28 }
 0x3b1   : > { %v1589_v29 = vpop.f32.mrf.mxu0  ;;  %1601 = vmatprep.mubr.msk.f32.mxu1 %vm1703_vm0, %v1702_v0 }
 0x3b3   : > { %v1124_v30 = vpop.f32.mrf.mxu0 }
 0x3b4   : > { %1602 = vmatmul.mubr.msk.f32.gmra.mxu1 %vm901_vm2, %v1124_v30 }
 0x3b5   : > { %v1592_v31 = vpop.f32.mrf.mxu0 }
 0x46c   : > { %v1204_v32 = vpop.f32.mrf.mxu1 }
 0x46e   : > { %v1597_v33 = vpop.f32.mrf.mxu1 }
 0x470   : > { %v1209_v34 = vpop.f32.mrf.mxu1 }
 0x472   : > { %v1600_v35 = vpop.f32.mrf.mxu1  ;;  %1221 = sbr.rel (%p1467_p10) target bundleno = 1146 (0x47a), region = 64 }
 0x474   : > { %v1214_v36 = vpop.f32.mrf.mxu1 }
 0x476   : > { %v1603_v37 = vpop.f32.mrf.mxu1 }
 0x477   : > { %vm1224_vm6 = vcmask 254976   ;;  %v1704_v38 = vmov 0.0  }
 0x478   : > { %1222 = vst.msk [vmem:[#allocation2] sm:$0xff] %vm623_vm1, %v1704_v38  ;;  %1223 = vst.msk [vmem:[#allocation2 + $0x8] sm:$0xff] %vm623_vm1, %v1704_v38 }
 0x479   : > { %1225 = vst.msk [vmem:[#allocation2 + $0x10] sm:$0x3] %vm1224_vm6, %v1704_v38 }
 0x47a PF: > { %vm1234_vm7 = vcmask 254976   ;;  %p1468_p11 = scmp.ne.s32.totalorder %s1684_s13, 3 }
 0x47f   : > { %v1226_v0 = vld [vmem:[#allocation2] sm:$0xff]  ;;  %v1227_v39 = vld [vmem:[#allocation2 + $0x8] sm:$0xff]  ;;  %1239 = sbr.rel (%p1468_p11) target bundleno = 1166 (0x48e), region = 68 }
 0x480   : > { %v1228_v40 = vld [vmem:[#allocation2 + $0x10] sm:$0x3]  ;;  %v1229_v41 = vadd.f32 %v1226_v0, %v1204_v32  ;;  %v1230_v42 = vadd.f32 %v1227_v39, %v1209_v34 }
 0x481   : > { %v1231_v43 = vadd.f32 %v1228_v40, %v1214_v36 }
 0x482   : > { %1232 = vst.msk [vmem:[#allocation2] sm:$0xff] %vm623_vm1, %v1229_v41  ;;  %1233 = vst.msk [vmem:[#allocation2 + $0x8] sm:$0xff] %vm623_vm1, %v1230_v42 }
 0x483   : > { %1235 = vst.msk [vmem:[#allocation2 + $0x10] sm:$0x3] %vm1234_vm7, %v1231_v43 }
 0x484   : > { %v1469_v45 = vld [vmem:[%s1978_s9] ss:$0 sm:$0xff] }
 0x489   : > { %v1240_v44 = vld [vmem:[#allocation2] sm:$0xff]  ;;  %v1241_v46 = vld [vmem:[#allocation2 + $0x8] sm:$0xff] }
 0x48a   : > { %v1250_v47 = vadd.f32 %v1469_v45, %v1240_v44  ;;  %v1251_v48 = vadd.f32 %v1469_v45, %v1241_v46  ;;  %v1242_v49 = vld [vmem:[#allocation2 + $0x10] sm:$0x3] }
 0x48b   : > { %v1252_v50 = vadd.f32 %v1469_v45, %v1242_v49 }
 0x48c   : > { %1253 = vst.msk [vmem:[%s1820_s12] sm:$0xff] %vm623_vm1, %v1250_v47  ;;  %1254 = vst.msk [vmem:[%s1820_s12 + $0x8] sm:$0xff] %vm623_vm1, %v1251_v48 }
 0x48d   : > { %1255 = vst.msk [vmem:[%s1820_s12 + $0x10] sm:$0x3] %vm1234_vm7, %v1252_v50 }
 0x48e PF: > { %s20_s17 = sadd.s32 1, %s1700_s17   ;;  %s1982_s13 = smov %s1692_s15 }
 0x48f   : > { %p17_p12 = scmp.ge.s32.totalorder %s20_s17, 34   ;;  %s1983_s14 = smov %s1696_s16 }
 0x490   : > { %s1984_s15 = smov %s1987_s18  ;;  %s1985_s16 = smov %s1991_s19 }
 0x491   :  { %19 = sbr.rel (!%p17_p12) target bundleno = 3 (0x3), region = 122 }

</bundles_post_ra>
